<compile_context>
chip_gen: v7x
topology: tpu7x:2x2x1
jax: 0.10.0
libtpu: 0.0.40
codegen_flags: <defaults>
</compile_context>

<pallas_src>
import jax
import jax.numpy as jnp
from jax.experimental import pallas as pl
from jax.experimental.pallas import tpu as pltpu

LANE = 128
SUBLANE = 8
_SINGLE_STEP_MAX_BATCH = 512  # below this, one grid step beats per-step overhead


def _round_up(n, m):
    return ((n + m - 1) // m) * m


# --------------------------------------------------------------------------- kernel
def fused_affine_kernel(x_ref, w_ref, b_ref, o_ref):
    """One MXU pass per batch tile: o = x @ W + b (f32 accumulate, f32 bias add)."""
    acc = jnp.dot(x_ref[...], w_ref[...], preferred_element_type=jnp.float32)
    o_ref[...] = (acc + b_ref[...]).astype(o_ref.dtype)


# ------------------------------------------------------------------ one-time prep
def fuse_params(params):
    """Collapse the 3 linear layers into a single exact affine map (no activations).

    Fusion is done in f32; if operands are ever cast to bf16 for the MXU, fuse in f32
    first and downcast only the fused W (compounding bf16 fusion error is worse).
    """
    w1, b1 = params["w1"], params["b1"]
    w2, b2 = params["w2"], params["b2"]
    w3, b3 = params["w3"], params["b3"]
    w = (w1 @ w2) @ w3                      # [in, out]
    b = (b1 @ w2 + b2) @ w3 + b3            # [1, out]
    return w, b


def prepare_params(params):
    """Fuse + lane-pad once; cache the result and reuse it for every forward call."""
    w, b = fuse_params(params)
    f_in, n_out = w.shape
    n_pad = max(LANE, _round_up(n_out, LANE))          # lane-dense output columns
    w_pad = jnp.zeros((f_in, n_pad), w.dtype).at[:, :n_out].set(w)
    b_pad = jnp.zeros((1, n_pad), b.dtype).at[:, :n_out].set(b)
    return {"w_pad": w_pad, "b_pad": b_pad, "n_out": n_out}


# ---------------------------------------------------------------------- VMEM budget
def _vmem_budget(tm, f_in, n_pad, itemsize):
    try:
        cap = int(pltpu.get_tpu_info().vmem_capacity_bytes)
    except Exception:
        cap = 64 << 20  # conservative per-TC capacity (v7x)
    x_tile = tm * _round_up(f_in, LANE) * itemsize
    o_tile = tm * n_pad * itemsize
    w_bytes = _round_up(f_in, SUBLANE) * n_pad * itemsize
    b_bytes = SUBLANE * n_pad * itemsize
    # x / out are batch-tiled -> double-buffered; W / b are grid-invariant -> counted once.
    need = 2 * (x_tile + o_tile) + w_bytes + b_bytes + (2 << 20)
    return int(min(max(need, 4 << 20), int(0.75 * cap)))


# --------------------------------------------------------------------- pallas_call
def _build_forward(b_padded, tm, f_in, n_pad, dtype, single_buffer_params):
    grid = (b_padded // tm,)
    param_mode = {"pipeline_mode": pl.Buffered(1)} if single_buffer_params else {}
    vmem_bytes = _vmem_budget(tm, f_in, n_pad, jnp.dtype(dtype).itemsize)
    return pl.pallas_call(
        fused_affine_kernel,
        out_shape=jax.ShapeDtypeStruct((b_padded, n_pad), dtype),
        grid=grid,
        in_specs=[
            pl.BlockSpec((tm, f_in), lambda i: (i, 0)),                 # x: batch-tiled
            pl.BlockSpec((f_in, n_pad), lambda i: (0, 0), **param_mode),  # W: VMEM-resident
            pl.BlockSpec((1, n_pad), lambda i: (0, 0), **param_mode),     # b: VMEM-resident
        ],
        out_specs=pl.BlockSpec((tm, n_pad), lambda i: (i, 0)),
        compiler_params=pltpu.CompilerParams(
            dimension_semantics=("parallel",),
            vmem_limit_bytes=vmem_bytes,
        ),
    )


def blob_model_forward(x, prepared, *, tm=512, slice_output=True):
    """x: [B, input_features] float32 -> [B, output_features] (or padded slab)."""
    w_pad, b_pad, n_out = prepared["w_pad"], prepared["b_pad"], prepared["n_out"]
    B, f_in = x.shape
    n_pad = w_pad.shape[1]

    # Batch tiling policy (review items 1 & 2):
    #  - small B: one grid step (no per-step overhead)
    #  - large B: >= 2 grid steps so the "parallel" axis can shard across v7x's 2 TCs,
    #    with tm up to 512 (mem-bound regime sweet spot on v6e).
    if B <= _SINGLE_STEP_MAX_BATCH:
        tm_eff = max(SUBLANE, _round_up(B, SUBLANE))
    else:
        half = _round_up(pl.cdiv(B, 2), SUBLANE)
        tm_eff = max(SUBLANE, _round_up(min(tm, half), SUBLANE))

    b_padded = _round_up(B, tm_eff)
    if b_padded != B:
        x = jnp.pad(x, ((0, b_padded - B), (0, 0)))

    # TODO(synk): once tm*F + F*n_pad tiles approach ~1/4 of the per-gen VMEM budget
    # (real input widths), add a K grid axis ("arbitrary") with an f32 accumulator.
    try:
        call = _build_forward(b_padded, tm_eff, f_in, n_pad, x.dtype, True)
        out_padded = call(x, w_pad, b_pad)
    except Exception:
        # pl.Buffered(1) not accepted by this build -> default double-buffering.
        call = _build_forward(b_padded, tm_eff, f_in, n_pad, x.dtype, False)
        out_padded = call(x, w_pad, b_pad)

    if not slice_output:
        return out_padded            # lane-dense padded slab for fused consumers
    return out_padded[:B, :n_out]


# ------------------------------------------------------------------- init + reference
def init_params(key, input_features, output_features, hidden_units=8):
    """torch.nn.Linear-style init: U(-1/sqrt(fan_in), 1/sqrt(fan_in)).
    Weights stored pre-transposed as [in, out] for x @ W."""
    def linear_init(k, fan_in, fan_out):
        kw, kb = jax.random.split(k)
        bound = 1.0 / jnp.sqrt(float(fan_in))
        w = jax.random.uniform(kw, (fan_out, fan_in), jnp.float32, -bound, bound).T
        b = jax.random.uniform(kb, (1, fan_out), jnp.float32, -bound, bound)
        return w, b

    k1, k2, k3 = jax.random.split(key, 3)
    w1, b1 = linear_init(k1, input_features, hidden_units)
    w2, b2 = linear_init(k2, hidden_units, hidden_units)
    w3, b3 = linear_init(k3, hidden_units, output_features)
    return {"w1": w1, "b1": b1, "w2": w2, "b2": b2, "w3": w3, "b3": b3}


def reference_forward(x, params):
    """Pure-JAX reference mirroring the PyTorch module layer-by-layer."""
    h = x @ params["w1"] + params["b1"]
    h = h @ params["w2"] + params["b2"]
    return h @ params["w3"] + params["b3"]


if __name__ == "__main__":
    # Small shapes consistent with the module (blob classification style).
    input_features, output_features, hidden_units = 4, 3, 8
    batch = 32

    key = jax.random.PRNGKey(0)
    k_params, k_x = jax.random.split(key)
    params = init_params(k_params, input_features, output_features, hidden_units)
    x = jax.random.normal(k_x, (batch, input_features), jnp.float32)

    prepared = prepare_params(params)            # fuse + pad ONCE, reused per forward
    out = blob_model_forward(x, prepared)        # single grid step for B=32
    out = jax.block_until_ready(out)

    ref = reference_forward(x, params)
    assert out.shape == (batch, output_features), out.shape
    assert jnp.allclose(out, ref, atol=1e-5, rtol=1e-5)

    print("KERNEL_OK")
</pallas_src>

<mosaic_0001>
module attributes {stable_mosaic.version = 11 : i64} {
  func.func @fused_affine_kernel(%arg0: i32, %arg1: memref<32x4xf32, #tpu.memory_space<vmem>>, %arg2: memref<4x128xf32, #tpu.memory_space<vmem>>, %arg3: memref<1x128xf32, #tpu.memory_space<vmem>>, %arg4: memref<32x128xf32, #tpu.memory_space<vmem>>) attributes {dimension_semantics = [#tpu.dimension_semantics<parallel>], iteration_bounds = array<i64: 1>, scalar_prefetch = 0 : i64, scratch_operands = 0 : i64, tpu.core_type = #tpu.core_type<tc>, window_params = [{transform_indices = @transform_0, window_bounds = array<i64: 32, 4>}, {pipeline_mode = #tpu.pipeline_mode<synchronous>, transform_indices = @transform_1, window_bounds = array<i64: 4, 128>}, {pipeline_mode = #tpu.pipeline_mode<synchronous>, transform_indices = @transform_2, window_bounds = array<i64: 1, 128>}, {transform_indices = @transform_3, window_bounds = array<i64: 32, 128>}]} {
    %c0 = arith.constant 0 : index
    %c0_0 = arith.constant 0 : index
    %0 = vector.load %arg1[%c0, %c0_0] : memref<32x4xf32, #tpu.memory_space<vmem>>, vector<32x4xf32>
    %c0_1 = arith.constant 0 : index
    %c0_2 = arith.constant 0 : index
    %1 = vector.load %arg2[%c0_1, %c0_2] : memref<4x128xf32, #tpu.memory_space<vmem>>, vector<4x128xf32>
    %cst = arith.constant dense<0.000000e+00> : vector<32x128xf32>
    %2 = tpu.matmul %0, %1, %cst {dimension_numbers = #tpu.dot_dimension_numbers<[1], [0], [0], [1], [0, 0, 1, 1], [], []>} : vector<32x4xf32>, vector<4x128xf32>, vector<32x128xf32> -> vector<32x128xf32>
    %c0_3 = arith.constant 0 : index
    %c0_4 = arith.constant 0 : index
    %3 = vector.load %arg3[%c0_3, %c0_4] : memref<1x128xf32, #tpu.memory_space<vmem>>, vector<1x128xf32>
    %4 = vector.broadcast %3 : vector<1x128xf32> to vector<32x128xf32>
    %5 = arith.addf %2, %4 : vector<32x128xf32>
    %c0_5 = arith.constant 0 : index
    %c0_6 = arith.constant 0 : index
    %6 = vector.load %arg4[%c0_5, %c0_6] : memref<32x128xf32, #tpu.memory_space<vmem>>, vector<32x128xf32>
    tpu.vector_store %arg4[%c0_5, %c0_6], %5 {strides = array<i32>} : memref<32x128xf32, #tpu.memory_space<vmem>>, vector<32x128xf32>,
    return
  }
  func.func @transform_0(%arg0: i32) -> (i32, i32) {
    %c0_i32 = arith.constant 0 : i32
    %c0_i32_0 = arith.constant 0 : i32
    return %arg0, %c0_i32 : i32, i32
  }
  func.func @transform_1(%arg0: i32) -> (i32, i32) {
    %c0_i32 = arith.constant 0 : i32
    %c0_i32_0 = arith.constant 0 : i32
    %c0_i32_1 = arith.constant 0 : i32
    return %c0_i32, %c0_i32_0 : i32, i32
  }
  func.func @transform_2(%arg0: i32) -> (i32, i32) {
    %c0_i32 = arith.constant 0 : i32
    %c0_i32_0 = arith.constant 0 : i32
    %c0_i32_1 = arith.constant 0 : i32
    return %c0_i32, %c0_i32_0 : i32, i32
  }
  func.func @transform_3(%arg0: i32) -> (i32, i32) {
    %c0_i32 = arith.constant 0 : i32
    %c0_i32_0 = arith.constant 0 : i32
    return %arg0, %c0_i32 : i32, i32
  }
}

module attributes {stable_mosaic.version = 11 : i64} {
  func.func @fused_affine_kernel(%arg0: i32, %arg1: memref<32x4xf32, #tpu.memory_space<vmem>>, %arg2: memref<4x128xf32, #tpu.memory_space<vmem>>, %arg3: memref<1x128xf32, #tpu.memory_space<vmem>>, %arg4: memref<32x128xf32, #tpu.memory_space<vmem>>) attributes {dimension_semantics = [#tpu.dimension_semantics<parallel>], iteration_bounds = array<i64: 1>, scalar_prefetch = 0 : i64, scratch_operands = 0 : i64, tpu.core_type = #tpu.core_type<tc>, window_params = [{transform_indices = @transform_0, window_bounds = array<i64: 32, 4>}, {pipeline_mode = #tpu.pipeline_mode<synchronous>, transform_indices = @transform_1, window_bounds = array<i64: 4, 128>}, {pipeline_mode = #tpu.pipeline_mode<synchronous>, transform_indices = @transform_2, window_bounds = array<i64: 1, 128>}, {transform_indices = @transform_3, window_bounds = array<i64: 32, 128>}]} {
    %c0 = arith.constant 0 : index
    %c0_0 = arith.constant 0 : index
    %0 = vector.load %arg1[%c0, %c0_0] : memref<32x4xf32, #tpu.memory_space<vmem>>, vector<32x4xf32>
    %c0_1 = arith.constant 0 : index
    %c0_2 = arith.constant 0 : index
    %1 = vector.load %arg2[%c0_1, %c0_2] : memref<4x128xf32, #tpu.memory_space<vmem>>, vector<4x128xf32>
    %cst = arith.constant dense<0.000000e+00> : vector<32x128xf32>
    %2 = tpu.matmul %0, %1, %cst {dimension_numbers = #tpu.dot_dimension_numbers<[1], [0], [0], [1], [0, 0, 1, 1], [], []>} : vector<32x4xf32>, vector<4x128xf32>, vector<32x128xf32> -> vector<32x128xf32>
    %c0_3 = arith.constant 0 : index
    %c0_4 = arith.constant 0 : index
    %3 = vector.load %arg3[%c0_3, %c0_4] : memref<1x128xf32, #tpu.memory_space<vmem>>, vector<1x128xf32>
    %4 = vector.broadcast %3 : vector<1x128xf32> to vector<32x128xf32>
    %5 = arith.addf %2, %4 : vector<32x128xf32>
    %c0_5 = arith.constant 0 : index
    %c0_6 = arith.constant 0 : index
    %6 = vector.load %arg4[%c0_5, %c0_6] : memref<32x128xf32, #tpu.memory_space<vmem>>, vector<32x128xf32>
    tpu.vector_store %arg4[%c0_5, %c0_6], %5 {strides = array<i32>} : memref<32x128xf32, #tpu.memory_space<vmem>>, vector<32x128xf32>,
    return
  }
  func.func @transform_0(%arg0: i32) -> (i32, i32) {
    %c0_i32 = arith.constant 0 : i32
    %c0_i32_0 = arith.constant 0 : i32
    return %arg0, %c0_i32 : i32, i32
  }
  func.func @transform_1(%arg0: i32) -> (i32, i32) {
    %c0_i32 = arith.constant 0 : i32
    %c0_i32_0 = arith.constant 0 : i32
    %c0_i32_1 = arith.constant 0 : i32
    return %c0_i32, %c0_i32_0 : i32, i32
  }
  func.func @transform_2(%arg0: i32) -> (i32, i32) {
    %c0_i32 = arith.constant 0 : i32
    %c0_i32_0 = arith.constant 0 : i32
    %c0_i32_1 = arith.constant 0 : i32
    return %c0_i32, %c0_i32_0 : i32, i32
  }
  func.func @transform_3(%arg0: i32) -> (i32, i32) {
    %c0_i32 = arith.constant 0 : i32
    %c0_i32_0 = arith.constant 0 : i32
    return %arg0, %c0_i32 : i32, i32
  }
}

</mosaic_0001>

<bundles_post_ra>
// kernel: tpu_custom_call.1
= control target key start
LH: loop header
LB: loop body
LE: loop exit
PB: predicated region body
PF: predicated region fallthrough
CT: control target
= control target key end

     0   :  { %vm40_vm0 = vcmask 1043456   ;;  %vm27_vm1 = vcmask 31744   ;;  %s250_s0 = inlined_call_operand.vmem [shape: f32[32,4], index: 0, kind: input, shape index: {}]   ;;  %s251_s1 = inlined_call_operand.vmem [shape: f32[4,128], index: 1, kind: input, shape index: {}]   ;;  %s252_s2 = inlined_call_operand.vmem [shape: f32[1,128], index: 2, kind: input, shape index: {}]   ;;  %s253_s3 = inlined_call_operand.hbm [shape: f32[32,128], index: 3, kind: output, shape index: {}]  }
   0x1   :  { %v19_v0 = vld [vmem:[%s251_s1] sm:$0xf]  ;;  %v17_v2 = vld [vmem:[%s250_s0 + $0x10] sm:$0xff]  ;;  %v16_v3 = vld [vmem:[%s250_s0 + $0x8] sm:$0xff] }
   0x2   :  { %v15_v1 = vld [vmem:[%s250_s0] sm:$0xff]  ;;  %160 = vmatprep.subr.msk.mxu0 %vm40_vm0, %v19_v0  ;;  %168 = vmatprep.subr.msk.mxu1 %vm40_vm0, %v19_v0  ;;  %v18_v4 = vld [vmem:[%s250_s0 + $0x18] sm:$0xff] }
   0x3   :  { %8 = vsyncpa [#allocation3], 0  ;;  %161 = vmatpush3.msk.msra.mxu0 %vm40_vm0, %v19_v0  ;;  %169 = vmatpush3.msk.msra.mxu1 %vm40_vm0, %v19_v0  ;;  %v149_v5 = vld [vmem:[%s252_s2] ss:$0 sm:$0xff]  ;;  %s197_s23 = smov [#allocation2]  }
   0x4   :  { %162 = vmatprep.mubr.msk.f32.mxu0 %vm27_vm1, %v15_v1  ;;  %165 = vmatprep.mubr.msk.f32.mxu1 %vm27_vm1, %v17_v2  ;;  %s138_s24 = sshll.u32 %s197_s23, 4  ;;  %s139_s24 = int_to_ptr.vmem [resolvable:$true] %s138_s24 }
   0x5   :  { %163 = vmatmul.mubr.msk.f32.vlgmr.msra.gmra.mrb[0].mxu0 %vm27_vm1, %v16_v3  ;;  %166 = vmatmul.mubr.msk.f32.vlgmr.msra.gmra.mrb[0].mxu1 %vm27_vm1, %v18_v4  ;;  %s173_s0 = scalar_lea.vmem %s139_s24, 512  ;;  %p178_p1 = scmp.lt.s32.totalorder %s139_s24, %s139_s24 }
   0x6   :  { %p174_p0 = scmp.ne.s32.totalorder %s139_s24, %s173_s0  ;;  %p179_p2 = scmp.lt.s32.totalorder %s173_s0, %s173_s0 }
   0x8   :  { %p180_p3 = por %p179_p2, %p178_p1 }
   0xa   :  { %p181_p4 = pnand %p180_p3, %p174_p0 }
  0xd8   :  { %v164_v6 = vpop.f32.mrb[0].mxu0  ;;  %v167_v7 = vpop.f32.mrb[0].mxu1 }
  0xd9   :  { %v116_v8 = vadd.f32 %v164_v6, %v149_v5  ;;  %v126_v9 = vadd.f32 %v167_v7, %v149_v5  ;;  %v110_v10 = vpop.f32.mrb[1].mxu0  ;;  %v120_v11 = vpop.f32.mrb[1].mxu1 }
  0xda   :  { %v111_v12 = vadd.f32 %v149_v5, %v110_v10  ;;  %v121_v13 = vadd.f32 %v149_v5, %v120_v11 }
  0xdb   :  { %130 = vst [vmem:[#allocation2 + $0x8] sm:$0xff] %v116_v8  ;;  %132 = vst [vmem:[#allocation2 + $0x18] sm:$0xff] %v126_v9 }
  0xdc   :  { %129 = vst [vmem:[#allocation2] sm:$0xff] %v111_v12  ;;  %131 = vst [vmem:[#allocation2 + $0x10] sm:$0xff] %v121_v13 }
  0xdd   :  { %184 = shalt.err (!%p181_p4)
}
  0xde   :  { %s185_s26 = scalar_lea.hbm %s253_s3, 512 }
  0xdf   :  { %p186_p5 = scmp.ne.s32.totalorder %s253_s3, %s185_s26  ;;  %p189_p6 = scmp.lt.u32.totalorder %s185_s26, %s253_s3 }
  0xe1   :  { %p191_p7 = pnand %p189_p6, %p186_p5 }
  0xe3   :  { %194 = shalt.err (!%p191_p7)
}
  0xe4   :  { %s198_s4 = smov 128   ;;  %s199_s5 = smov 8  }
  0xe5   :  { %144 = dma.vmem_to_hbm [thread:$0]  %s139_s24, 512, %s253_s3, [#allocation3], %s198_s4, %s198_s4, %s199_s5  }
  0xe6   :  { %195 = dma.done.wait [#allocation3], 512  }
  0xe7   :  { %196 = vsyncadd [#allocation3], 4294966784 }
  0xe8   :  { %148 = vsyncpa [#allocation3], 1 }

// kernel: tpu_custom_call.1
= control target key start
LH: loop header
LB: loop body
LE: loop exit
PB: predicated region body
PF: predicated region fallthrough
CT: control target
= control target key end

     0   :  { %vm40_vm0 = vcmask 1043456   ;;  %vm27_vm1 = vcmask 31744   ;;  %s250_s0 = inlined_call_operand.vmem [shape: f32[32,4], index: 0, kind: input, shape index: {}]   ;;  %s251_s1 = inlined_call_operand.vmem [shape: f32[4,128], index: 1, kind: input, shape index: {}]   ;;  %s252_s2 = inlined_call_operand.vmem [shape: f32[1,128], index: 2, kind: input, shape index: {}]   ;;  %s253_s3 = inlined_call_operand.hbm [shape: f32[32,128], index: 3, kind: output, shape index: {}]  }
   0x1   :  { %v19_v0 = vld [vmem:[%s251_s1] sm:$0xf]  ;;  %v17_v2 = vld [vmem:[%s250_s0 + $0x10] sm:$0xff]  ;;  %v16_v3 = vld [vmem:[%s250_s0 + $0x8] sm:$0xff] }
   0x2   :  { %v15_v1 = vld [vmem:[%s250_s0] sm:$0xff]  ;;  %160 = vmatprep.subr.msk.mxu0 %vm40_vm0, %v19_v0  ;;  %168 = vmatprep.subr.msk.mxu1 %vm40_vm0, %v19_v0  ;;  %v18_v4 = vld [vmem:[%s250_s0 + $0x18] sm:$0xff] }
   0x3   :  { %8 = vsyncpa [#allocation3], 0  ;;  %161 = vmatpush3.msk.msra.mxu0 %vm40_vm0, %v19_v0  ;;  %169 = vmatpush3.msk.msra.mxu1 %vm40_vm0, %v19_v0  ;;  %v149_v5 = vld [vmem:[%s252_s2] ss:$0 sm:$0xff]  ;;  %s197_s23 = smov [#allocation2]  }
   0x4   :  { %162 = vmatprep.mubr.msk.f32.mxu0 %vm27_vm1, %v15_v1  ;;  %165 = vmatprep.mubr.msk.f32.mxu1 %vm27_vm1, %v17_v2  ;;  %s138_s24 = sshll.u32 %s197_s23, 4  ;;  %s139_s24 = int_to_ptr.vmem [resolvable:$true] %s138_s24 }
   0x5   :  { %163 = vmatmul.mubr.msk.f32.vlgmr.msra.gmra.mrb[0].mxu0 %vm27_vm1, %v16_v3  ;;  %166 = vmatmul.mubr.msk.f32.vlgmr.msra.gmra.mrb[0].mxu1 %vm27_vm1, %v18_v4  ;;  %s173_s0 = scalar_lea.vmem %s139_s24, 512  ;;  %p178_p1 = scmp.lt.s32.totalorder %s139_s24, %s139_s24 }
   0x6   :  { %p174_p0 = scmp.ne.s32.totalorder %s139_s24, %s173_s0  ;;  %p179_p2 = scmp.lt.s32.totalorder %s173_s0, %s173_s0 }
   0x8   :  { %p180_p3 = por %p179_p2, %p178_p1 }
   0xa   :  { %p181_p4 = pnand %p180_p3, %p174_p0 }
  0xd8   :  { %v164_v6 = vpop.f32.mrb[0].mxu0  ;;  %v167_v7 = vpop.f32.mrb[0].mxu1 }
  0xd9   :  { %v116_v8 = vadd.f32 %v164_v6, %v149_v5  ;;  %v126_v9 = vadd.f32 %v167_v7, %v149_v5  ;;  %v110_v10 = vpop.f32.mrb[1].mxu0  ;;  %v120_v11 = vpop.f32.mrb[1].mxu1 }
  0xda   :  { %v111_v12 = vadd.f32 %v149_v5, %v110_v10  ;;  %v121_v13 = vadd.f32 %v149_v5, %v120_v11 }
  0xdb   :  { %130 = vst [vmem:[#allocation2 + $0x8] sm:$0xff] %v116_v8  ;;  %132 = vst [vmem:[#allocation2 + $0x18] sm:$0xff] %v126_v9 }
  0xdc   :  { %129 = vst [vmem:[#allocation2] sm:$0xff] %v111_v12  ;;  %131 = vst [vmem:[#allocation2 + $0x10] sm:$0xff] %v121_v13 }
  0xdd   :  { %184 = shalt.err (!%p181_p4)
}
  0xde   :  { %s185_s26 = scalar_lea.hbm %s253_s3, 512 }
  0xdf   :  { %p186_p5 = scmp.ne.s32.totalorder %s253_s3, %s185_s26  ;;  %p189_p6 = scmp.lt.u32.totalorder %s185_s26, %s253_s3 }
  0xe1   :  { %p191_p7 = pnand %p189_p6, %p186_p5 }
  0xe3   :  { %194 = shalt.err (!%p191_p7)
}
  0xe4   :  { %s198_s4 = smov 128   ;;  %s199_s5 = smov 8  }
  0xe5   :  { %144 = dma.vmem_to_hbm [thread:$0]  %s139_s24, 512, %s253_s3, [#allocation3], %s198_s4, %s198_s4, %s199_s5  }
  0xe6   :  { %195 = dma.done.wait [#allocation3], 512  }
  0xe7   :  { %196 = vsyncadd [#allocation3], 4294966784 }
  0xe8   :  { %148 = vsyncpa [#allocation3], 1 }

</bundles_post_ra>
